<compile_context>
chip_gen: v5e
topology: v5e:2x2
jax: 0.10.0
libtpu: 0.0.40
codegen_flags: <defaults>
</compile_context>

<pallas_src>
import math

import jax
import jax.numpy as jnp
from jax.experimental import pallas as pl
from jax.experimental.pallas import tpu as pltpu


def fusion_mlp_kernel(x1_ref, x2_ref, w1a_ref, w1b_ref, b1_ref, wh_ref, bh_ref,
                      out_ref):
    # h = relu(mu1 @ W1a + mu2 @ W1b + b1)   (row-packed, block-diag weights)
    h = jnp.dot(x1_ref[...], w1a_ref[...], preferred_element_type=jnp.float32)
    h = h + jnp.dot(x2_ref[...], w1b_ref[...], preferred_element_type=jnp.float32)
    h = jnp.maximum(h + b1_ref[...], 0.0)
    # [mu_z | logvar_z] = h @ [Wmu | Wlv] + [bmu | blv]   (fused, lane-dense)
    out_ref[...] = (jnp.dot(h, wh_ref[...], preferred_element_type=jnp.float32)
                    + bh_ref[...]).astype(out_ref.dtype)


def _round_up(x, m):
    return (x + m - 1) // m * m


def _pack_factor(in_w1, in_w2, out_w, hidden_dim, max_weight_bytes=8 << 20):
    """Batch rows packed per kernel row so stores (and loads) are lane-dense."""
    k = 128 // math.gcd(128, out_w)            # smallest k with k*out_w % 128 == 0
    while k * min(in_w1, in_w2) < 128:         # make the input loads 128-lane dense
        k *= 2
    # Resident block-diagonal weights scale as k^2 -- keep them small.
    while k > 1 and 4 * k * (in_w1 + in_w2 + out_w) * k * hidden_dim > max_weight_bytes:
        k //= 2
    return max(k, 1)


def fusion_mlp_forward(mu1, logvar1, mu2, logvar2, params):
    """Matches FusionMLP.forward.  logvar1 / logvar2 are unused (as in PyTorch)."""
    del logvar1, logvar2
    w1, b1 = params["w1"], params["b1"]
    wmu, bmu = params["wmu"], params["bmu"]
    wlv, blv = params["wlv"], params["blv"]

    B, L1 = mu1.shape
    L2 = mu2.shape[1]
    hidden_dim = w1.shape[1]
    latent_dim = wmu.shape[1]
    out_w = 2 * latent_dim
    assert w1.shape[0] == L1 + L2, "fc1 input_dim must equal mu1+mu2 widths"

    # --- pack factor & one-time weight prep (tiny, layout plumbing only) ----
    k = _pack_factor(L1, L2, out_w, hidden_dim)
    eye_k = jnp.eye(k, dtype=w1.dtype)
    w1a_bd = jnp.kron(eye_k, w1[:L1])                      # (k*L1, k*H)
    w1b_bd = jnp.kron(eye_k, w1[L1:])                      # (k*L2, k*H)
    b1_p = jnp.tile(b1, k).reshape(1, k * hidden_dim)
    w_head = jnp.concatenate([wmu, wlv], axis=1)           # (H, 2*latent)
    wh_bd = jnp.kron(eye_k, w_head)                        # (k*H, k*2*latent)
    bh_p = jnp.tile(jnp.concatenate([bmu, blv]), k).reshape(1, k * out_w)

    # --- batch packing (row-major reshape is free; pad only to 8*k rows) ----
    B_pad = _round_up(B, 8 * k)
    if B_pad != B:
        pad = ((0, B_pad - B), (0, 0))
        mu1 = jnp.pad(mu1, pad)
        mu2 = jnp.pad(mu2, pad)
    R = B_pad // k                                         # packed rows
    x1p = mu1.reshape(R, k * L1)
    x2p = mu2.reshape(R, k * L2)

    # --- tile sizing: ~2 MiB of activation traffic per grid step ------------
    bytes_per_packed_row = 4 * k * (L1 + L2 + out_w)
    tile_r = (2 << 20) // bytes_per_packed_row
    tile_r = max(8, tile_r // 8 * 8)
    tile_r = min(tile_r, R)
    # v7x has 2 TensorCores: ensure >= 2 parallel blocks when batch is large.
    if tile_r == R and R >= 128:
        tile_r = _round_up(pl.cdiv(R, 2), 8)
    grid = (pl.cdiv(R, tile_r),)                           # ragged last block OK

    resident = lambda shape: pl.BlockSpec(shape, lambda i: (0,) * len(shape))

    out = pl.pallas_call(
        fusion_mlp_kernel,
        out_shape=jax.ShapeDtypeStruct((R, k * out_w), jnp.float32),
        grid=grid,
        in_specs=[
            pl.BlockSpec((tile_r, k * L1), lambda i: (i, 0)),   # mu1 (packed, tiled)
            pl.BlockSpec((tile_r, k * L2), lambda i: (i, 0)),   # mu2 (packed, tiled)
            resident(w1a_bd.shape),                             # weights: resident
            resident(w1b_bd.shape),
            resident(b1_p.shape),
            resident(wh_bd.shape),
            resident(bh_p.shape),
        ],
        out_specs=pl.BlockSpec((tile_r, k * out_w), lambda i: (i, 0)),
        compiler_params=pltpu.CompilerParams(
            dimension_semantics=("parallel",)),
    )(x1p, x2p, w1a_bd, w1b_bd, b1_p, wh_bd, bh_p)

    out = out.reshape(B_pad, out_w)[:B]                    # unpack rows, drop pad
    mu_z = out[:, :latent_dim]
    logvar_z = out[:, latent_dim:]
    return mu_z, logvar_z


def init_params(key, input_dim, hidden_dim, latent_dim):
    """Deterministic init mimicking nn.Linear's default U(-1/sqrt(fan_in), +...)."""
    ks = jax.random.split(key, 6)

    def lin(kw, kb, fan_in, fan_out):
        bound = 1.0 / jnp.sqrt(fan_in)
        w = jax.random.uniform(kw, (fan_in, fan_out), jnp.float32, -bound, bound)
        b = jax.random.uniform(kb, (fan_out,), jnp.float32, -bound, bound)
        return w, b

    w1, b1 = lin(ks[0], ks[1], input_dim, hidden_dim)
    wmu, bmu = lin(ks[2], ks[3], hidden_dim, latent_dim)
    wlv, blv = lin(ks[4], ks[5], hidden_dim, latent_dim)
    return {"w1": w1, "b1": b1, "wmu": wmu, "bmu": bmu, "wlv": wlv, "blv": blv}


if __name__ == "__main__":
    # Small shapes: two modalities each with latent 16 -> input_dim = 32.
    B = 8
    latent_dim = 16
    input_dim = 2 * latent_dim
    hidden_dim = 32

    key = jax.random.PRNGKey(0)
    k_par, k_m1, k_lv1, k_m2, k_lv2 = jax.random.split(key, 5)

    params = init_params(k_par, input_dim, hidden_dim, latent_dim)

    mu1 = jax.random.normal(k_m1, (B, latent_dim), jnp.float32)
    logvar1 = jax.random.normal(k_lv1, (B, latent_dim), jnp.float32)
    mu2 = jax.random.normal(k_m2, (B, latent_dim), jnp.float32)
    logvar2 = jax.random.normal(k_lv2, (B, latent_dim), jnp.float32)

    mu_z, logvar_z = fusion_mlp_forward(mu1, logvar1, mu2, logvar2, params)
    jax.block_until_ready((mu_z, logvar_z))

    # Pure-JAX reference check (force accurate f32 matmuls in the reference).
    with jax.default_matmul_precision("highest"):
        fusion_input = jnp.concatenate([mu1, mu2], axis=-1)
        h_ref = jnp.maximum(fusion_input @ params["w1"] + params["b1"], 0.0)
        mu_ref = h_ref @ params["wmu"] + params["bmu"]
        lv_ref = h_ref @ params["wlv"] + params["blv"]

    assert mu_z.shape == (B, latent_dim) and logvar_z.shape == (B, latent_dim)
    assert jnp.allclose(mu_z, mu_ref, atol=1e-4, rtol=1e-4)
    assert jnp.allclose(logvar_z, lv_ref, atol=1e-4, rtol=1e-4)

    print("KERNEL_OK")
</pallas_src>

<mosaic_0001>
module attributes {stable_mosaic.version = 11 : i64} {
  func.func @fusion_mlp_kernel(%arg0: i32, %arg1: memref<8x128xf32, #tpu.memory_space<vmem>>, %arg2: memref<8x128xf32, #tpu.memory_space<vmem>>, %arg3: memref<128x256xf32, #tpu.memory_space<vmem>>, %arg4: memref<128x256xf32, #tpu.memory_space<vmem>>, %arg5: memref<1x256xf32, #tpu.memory_space<vmem>>, %arg6: memref<256x256xf32, #tpu.memory_space<vmem>>, %arg7: memref<1x256xf32, #tpu.memory_space<vmem>>, %arg8: memref<8x256xf32, #tpu.memory_space<vmem>>) attributes {dimension_semantics = [#tpu.dimension_semantics<parallel>], iteration_bounds = array<i64: 1>, scalar_prefetch = 0 : i64, scratch_operands = 0 : i64, tpu.core_type = #tpu.core_type<tc>, window_params = [{transform_indices = @transform_0, window_bounds = array<i64: 8, 128>}, {transform_indices = @transform_1, window_bounds = array<i64: 8, 128>}, {pipeline_mode = #tpu.pipeline_mode<synchronous>, transform_indices = @transform_2, window_bounds = array<i64: 128, 256>}, {pipeline_mode = #tpu.pipeline_mode<synchronous>, transform_indices = @transform_3, window_bounds = array<i64: 128, 256>}, {pipeline_mode = #tpu.pipeline_mode<synchronous>, transform_indices = @transform_4, window_bounds = array<i64: 1, 256>}, {pipeline_mode = #tpu.pipeline_mode<synchronous>, transform_indices = @transform_5, window_bounds = array<i64: 256, 256>}, {pipeline_mode = #tpu.pipeline_mode<synchronous>, transform_indices = @transform_6, window_bounds = array<i64: 1, 256>}, {transform_indices = @transform_7, window_bounds = array<i64: 8, 256>}]} {
    %c0 = arith.constant 0 : index
    %c0_0 = arith.constant 0 : index
    %0 = vector.load %arg1[%c0, %c0_0] : memref<8x128xf32, #tpu.memory_space<vmem>>, vector<8x128xf32>
    %c0_1 = arith.constant 0 : index
    %c0_2 = arith.constant 0 : index
    %1 = vector.load %arg3[%c0_1, %c0_2] : memref<128x256xf32, #tpu.memory_space<vmem>>, vector<128x256xf32>
    %cst = arith.constant dense<0.000000e+00> : vector<8x256xf32>
    %2 = tpu.matmul %0, %1, %cst {dimension_numbers = #tpu.dot_dimension_numbers<[1], [0], [0], [1], [0, 0, 1, 1], [], []>} : vector<8x128xf32>, vector<128x256xf32>, vector<8x256xf32> -> vector<8x256xf32>
    %c0_3 = arith.constant 0 : index
    %c0_4 = arith.constant 0 : index
    %3 = vector.load %arg2[%c0_3, %c0_4] : memref<8x128xf32, #tpu.memory_space<vmem>>, vector<8x128xf32>
    %c0_5 = arith.constant 0 : index
    %c0_6 = arith.constant 0 : index
    %4 = vector.load %arg4[%c0_5, %c0_6] : memref<128x256xf32, #tpu.memory_space<vmem>>, vector<128x256xf32>
    %cst_7 = arith.constant dense<0.000000e+00> : vector<8x256xf32>
    %5 = tpu.matmul %3, %4, %cst_7 {dimension_numbers = #tpu.dot_dimension_numbers<[1], [0], [0], [1], [0, 0, 1, 1], [], []>} : vector<8x128xf32>, vector<128x256xf32>, vector<8x256xf32> -> vector<8x256xf32>
    %6 = arith.addf %2, %5 : vector<8x256xf32>
    %c0_8 = arith.constant 0 : index
    %c0_9 = arith.constant 0 : index
    %7 = vector.load %arg5[%c0_8, %c0_9] : memref<1x256xf32, #tpu.memory_space<vmem>>, vector<1x256xf32>
    %8 = vector.broadcast %7 : vector<1x256xf32> to vector<8x256xf32>
    %9 = arith.addf %6, %8 : vector<8x256xf32>
    %cst_10 = arith.constant 0.000000e+00 : f32
    %10 = vector.broadcast %cst_10 : f32 to vector<8x256xf32>
    %11 = arith.maximumf %9, %10 : vector<8x256xf32>
    %c0_11 = arith.constant 0 : index
    %c0_12 = arith.constant 0 : index
    %12 = vector.load %arg6[%c0_11, %c0_12] : memref<256x256xf32, #tpu.memory_space<vmem>>, vector<256x256xf32>
    %cst_13 = arith.constant dense<0.000000e+00> : vector<8x256xf32>
    %13 = tpu.matmul %11, %12, %cst_13 {dimension_numbers = #tpu.dot_dimension_numbers<[1], [0], [0], [1], [0, 0, 1, 1], [], []>} : vector<8x256xf32>, vector<256x256xf32>, vector<8x256xf32> -> vector<8x256xf32>
    %c0_14 = arith.constant 0 : index
    %c0_15 = arith.constant 0 : index
    %14 = vector.load %arg7[%c0_14, %c0_15] : memref<1x256xf32, #tpu.memory_space<vmem>>, vector<1x256xf32>
    %15 = vector.broadcast %14 : vector<1x256xf32> to vector<8x256xf32>
    %16 = arith.addf %13, %15 : vector<8x256xf32>
    %c0_16 = arith.constant 0 : index
    %c0_17 = arith.constant 0 : index
    %17 = vector.load %arg8[%c0_16, %c0_17] : memref<8x256xf32, #tpu.memory_space<vmem>>, vector<8x256xf32>
    tpu.vector_store %arg8[%c0_16, %c0_17], %16 {strides = array<i32>} : memref<8x256xf32, #tpu.memory_space<vmem>>, vector<8x256xf32>,
    return
  }
  func.func @transform_0(%arg0: i32) -> (i32, i32) {
    %c0_i32 = arith.constant 0 : i32
    %c0_i32_0 = arith.constant 0 : i32
    return %arg0, %c0_i32 : i32, i32
  }
  func.func @transform_1(%arg0: i32) -> (i32, i32) {
    %c0_i32 = arith.constant 0 : i32
    %c0_i32_0 = arith.constant 0 : i32
    return %arg0, %c0_i32 : i32, i32
  }
  func.func @transform_2(%arg0: i32) -> (i32, i32) {
    %c0_i32 = arith.constant 0 : i32
    %c0_i32_0 = arith.constant 0 : i32
    %c0_i32_1 = arith.constant 0 : i32
    return %c0_i32, %c0_i32_0 : i32, i32
  }
  func.func @transform_3(%arg0: i32) -> (i32, i32) {
    %c0_i32 = arith.constant 0 : i32
    %c0_i32_0 = arith.constant 0 : i32
    %c0_i32_1 = arith.constant 0 : i32
    return %c0_i32, %c0_i32_0 : i32, i32
  }
  func.func @transform_4(%arg0: i32) -> (i32, i32) {
    %c0_i32 = arith.constant 0 : i32
    %c0_i32_0 = arith.constant 0 : i32
    %c0_i32_1 = arith.constant 0 : i32
    return %c0_i32, %c0_i32_0 : i32, i32
  }
  func.func @transform_5(%arg0: i32) -> (i32, i32) {
    %c0_i32 = arith.constant 0 : i32
    %c0_i32_0 = arith.constant 0 : i32
    %c0_i32_1 = arith.constant 0 : i32
    return %c0_i32, %c0_i32_0 : i32, i32
  }
  func.func @transform_6(%arg0: i32) -> (i32, i32) {
    %c0_i32 = arith.constant 0 : i32
    %c0_i32_0 = arith.constant 0 : i32
    %c0_i32_1 = arith.constant 0 : i32
    return %c0_i32, %c0_i32_0 : i32, i32
  }
  func.func @transform_7(%arg0: i32) -> (i32, i32) {
    %c0_i32 = arith.constant 0 : i32
    %c0_i32_0 = arith.constant 0 : i32
    return %arg0, %c0_i32 : i32, i32
  }
}

</mosaic_0001>

<bundles_post_ra>
// kernel: tpu_custom_call.1
= control target key start
LH: loop header
LB: loop body
LE: loop exit
PB: predicated region body
PF: predicated region fallthrough
CT: control target
= control target key end

     0   :  { %12 = vsyncpa [#allocation3], 0  ;;  %s660_s0 = inlined_call_operand.hbm [shape: f32[8,128], index: 0, kind: input, shape index: {}]   ;;  %s661_s1 = inlined_call_operand.hbm [shape: f32[8,128], index: 1, kind: input, shape index: {}]   ;;  %s662_s2 = inlined_call_operand.hbm [shape: f32[128,256], index: 2, kind: input, shape index: {}]   ;;  %s663_s3 = inlined_call_operand.hbm [shape: f32[128,256], index: 3, kind: input, shape index: {}]   ;;  %s664_s4 = inlined_call_operand.vmem [shape: f32[1,256], index: 4, kind: input, shape index: {}]   ;;  %s665_s5 = inlined_call_operand.hbm [shape: f32[256,256], index: 5, kind: input, shape index: {}]   ;;  %s666_s6 = inlined_call_operand.vmem [shape: f32[1,256], index: 6, kind: input, shape index: {}]   ;;  %s667_s7 = inlined_call_operand.hbm [shape: f32[8,256], index: 7, kind: output, shape index: {}]  }
   0x1   :  { %13 = vsyncpa [#allocation6], 0 }
   0x2   :  { %14 = vsyncpa [#allocation9], 0  ;;  %s32_s26 = sshll.u32 %s661_s1, 4  ;;  %s33_s26 = int_to_ptr.hbm [resolvable:$true] %s32_s26 }
   0x3   :  { %15 = vsyncpa [#allocation4], 0  ;;  %s588_s27 = smov [#allocation5]   ;;  %s55_s8 = sshll.u32 %s663_s3, 4  ;;  %s56_s8 = int_to_ptr.hbm [resolvable:$true] %s55_s8 }
   0x4   :  { %s34_s28 = sshll.u32 %s588_s27, 4  ;;  %s589_s9 = smov [#allocation8]   ;;  %s35_s28 = int_to_ptr.vmem [resolvable:$true] %s34_s28 }
   0x5   :  { %37 = dma.hbm_to_vmem [thread:$0]  %s33_s26, 128, %s35_s28, [#allocation6]  }
   0x6   :  { %s57_s10 = sshll.u32 %s589_s9, 4  ;;  %s21_s13 = sshll.u32 %s660_s0, 4  ;;  %s58_s10 = int_to_ptr.vmem [resolvable:$true] %s57_s10  ;;  %s22_s13 = int_to_ptr.hbm [resolvable:$true] %s21_s13 }
   0x7   :  { %s590_s1 = smov 256   ;;  %s591_s14 = smov 16  }
   0x8   :  { %63 = dma.hbm_to_vmem [thread:$0]  %s56_s8, 4096, %s58_s10, [#allocation9], %s590_s1, %s590_s1, %s591_s14  }
   0x9   :  { %s42_s17 = sshll.u32 %s662_s2, 4  ;;  %s592_s18 = smov [#allocation2]   ;;  %s43_s17 = int_to_ptr.hbm [resolvable:$true] %s42_s17 }
   0xa   :  { %s23_s19 = sshll.u32 %s592_s18, 4  ;;  %s593_s3 = smov [#allocation7]   ;;  %s24_s19 = int_to_ptr.vmem [resolvable:$true] %s23_s19 }
   0xb   :  { %26 = dma.hbm_to_vmem [thread:$0]  %s22_s13, 128, %s24_s19, [#allocation3]  }
   0xc   :  { %s44_s20 = sshll.u32 %s593_s3, 4  ;;  %s70_s0 = sshll.u32 %s665_s5, 4  ;;  %s45_s20 = int_to_ptr.vmem [resolvable:$true] %s44_s20  ;;  %s71_s0 = int_to_ptr.hbm [resolvable:$true] %s70_s0 }
   0xd   :  { %50 = dma.hbm_to_vmem [thread:$0]  %s43_s17, 4096, %s45_s20, [#allocation6], %s590_s1, %s590_s1, %s591_s14  }
   0xe   :  { %s594_s23 = smov [#allocation10]  }
   0xf   :  { %s72_s24 = sshll.u32 %s594_s23, 4  ;;  %s73_s24 = int_to_ptr.vmem [resolvable:$true] %s72_s24 }
  0x10   :  { %78 = dma.hbm_to_vmem [thread:$0]  %s71_s0, 8192, %s73_s24, [#allocation9], %s590_s1, %s590_s1, %s591_s14  }
  0x11   :  { %580 = dma.done.wait [#allocation3], 128  }
  0x12   :  { %581 = vsyncadd [#allocation3], 4294967168 }
  0x13   :  { %582 = dma.done.wait [#allocation6], 4224  }
  0x14   :  { %583 = vsyncadd [#allocation6], 4294963072 }
  0x15   :  { %584 = dma.done.wait [#allocation9], 12288  }
  0x16   :  { %585 = vsyncadd [#allocation9], 4294955008  ;;  %v132_v0 = vld [vmem:[#allocation7 + $0xf0] sm:$0xff]  ;;  %v130_v1 = vld [vmem:[#allocation7 + $0xe0] sm:$0xff]  ;;  %s416_s30 = sshll.u32 %s667_s7, 4  ;;  %s417_s30 = int_to_ptr.hbm [resolvable:$true] %s416_s30 }
  0x17   :  { %v133_v2 = vld [vmem:[#allocation7 + $0xf8] sm:$0xff]  ;;  %207 = vmatpush.msra.mxu2 %v132_v0  ;;  %v131_v3 = vld [vmem:[#allocation7 + $0xe8] sm:$0xff]  ;;  %v165_v4 = vld [vmem:[#allocation8 + $0xf0] sm:$0xff] }
  0x18   :  { %227 = vmatpush.msra.mxu3 %v133_v2  ;;  %v128_v5 = vld [vmem:[#allocation7 + $0xd0] sm:$0xff]  ;;  %167 = vmatpush.msra.mxu0 %v165_v4  ;;  %v129_v6 = vld [vmem:[#allocation7 + $0xd8] sm:$0xff]  ;;  %v163_v7 = vld [vmem:[#allocation8 + $0xe0] sm:$0xff] }
  0x19   :  { %208 = vmatpush.msra.mxu2 %v130_v1  ;;  %v126_v8 = vld [vmem:[#allocation7 + $0xc0] sm:$0xff]  ;;  %v166_v9 = vld [vmem:[#allocation8 + $0xf8] sm:$0xff]  ;;  %v127_v10 = vld [vmem:[#allocation7 + $0xc8] sm:$0xff] }
  0x1a   :  { %228 = vmatpush.msra.mxu3 %v131_v3  ;;  %168 = vmatpush.msra.mxu0 %v163_v7  ;;  %v161_v11 = vld [vmem:[#allocation8 + $0xd0] sm:$0xff]  ;;  %v164_v12 = vld [vmem:[#allocation8 + $0xe8] sm:$0xff]  ;;  %v159_v13 = vld [vmem:[#allocation8 + $0xc0] sm:$0xff] }
  0x1b   :  { %187 = vmatpush.msra.mxu1 %v166_v9  ;;  %209 = vmatpush.msra.mxu2 %v128_v5  ;;  %v162_v14 = vld [vmem:[#allocation8 + $0xd8] sm:$0xff]  ;;  %v124_v15 = vld [vmem:[#allocation7 + $0xb0] sm:$0xff]  ;;  %v160_v18 = vld [vmem:[#allocation8 + $0xc8] sm:$0xff] }
  0x1c   :  { %229 = vmatpush.msra.mxu3 %v129_v6  ;;  %169 = vmatpush.msra.mxu0 %v161_v11  ;;  %v125_v16 = vld [vmem:[#allocation7 + $0xb8] sm:$0xff]  ;;  %v157_v17 = vld [vmem:[#allocation8 + $0xb0] sm:$0xff]  ;;  %v122_v19 = vld [vmem:[#allocation7 + $0xa0] sm:$0xff] }
  0x1d   :  { %188 = vmatpush.msra.mxu1 %v164_v12  ;;  %210 = vmatpush.msra.mxu2 %v126_v8  ;;  %v123_v20 = vld [vmem:[#allocation7 + $0xa8] sm:$0xff]  ;;  %v155_v21 = vld [vmem:[#allocation8 + $0xa0] sm:$0xff]  ;;  %v158_v22 = vld [vmem:[#allocation8 + $0xb8] sm:$0xff] }
  0x1e   :  { %230 = vmatpush.msra.mxu3 %v127_v10  ;;  %170 = vmatpush.msra.mxu0 %v159_v13  ;;  %v120_v23 = vld [vmem:[#allocation7 + $0x90] sm:$0xff]  ;;  %v121_v24 = vld [vmem:[#allocation7 + $0x98] sm:$0xff]  ;;  %v156_v26 = vld [vmem:[#allocation8 + $0xa8] sm:$0xff] }
  0x1f   :  { %189 = vmatpush.msra.mxu1 %v162_v14  ;;  %211 = vmatpush.msra.mxu2 %v124_v15  ;;  %v153_v25 = vld [vmem:[#allocation8 + $0x90] sm:$0xff]  ;;  %v118_v27 = vld [vmem:[#allocation7 + $0x80] sm:$0xff]  ;;  %v119_v28 = vld [vmem:[#allocation7 + $0x88] sm:$0xff] }
  0x20   :  { %231 = vmatpush.msra.mxu3 %v125_v16  ;;  %171 = vmatpush.msra.mxu0 %v157_v17  ;;  %v151_v29 = vld [vmem:[#allocation8 + $0x80] sm:$0xff]  ;;  %v154_v30 = vld [vmem:[#allocation8 + $0x98] sm:$0xff]  ;;  %v116_v31 = vld [vmem:[#allocation7 + $0x70] sm:$0xff] }
  0x21   :  { %190 = vmatpush.msra.mxu1 %v160_v18  ;;  %212 = vmatpush.msra.mxu2 %v122_v19  ;;  %v117_v32 = vld [vmem:[#allocation7 + $0x78] sm:$0xff]  ;;  %v149_v33 = vld [vmem:[#allocation8 + $0x70] sm:$0xff]  ;;  %v152_v34 = vld [vmem:[#allocation8 + $0x88] sm:$0xff] }
  0x22   :  { %232 = vmatpush.msra.mxu3 %v123_v20  ;;  %172 = vmatpush.msra.mxu0 %v155_v21  ;;  %v114_v35 = vld [vmem:[#allocation7 + $0x60] sm:$0xff]  ;;  %v115_v36 = vld [vmem:[#allocation7 + $0x68] sm:$0xff]  ;;  %v150_v38 = vld [vmem:[#allocation8 + $0x78] sm:$0xff] }
  0x23   :  { %191 = vmatpush.msra.mxu1 %v158_v22  ;;  %213 = vmatpush.msra.mxu2 %v120_v23  ;;  %v147_v37 = vld [vmem:[#allocation8 + $0x60] sm:$0xff]  ;;  %v112_v39 = vld [vmem:[#allocation7 + $0x50] sm:$0xff]  ;;  %v113_v40 = vld [vmem:[#allocation7 + $0x58] sm:$0xff] }
  0x24   :  { %233 = vmatpush.msra.mxu3 %v121_v24  ;;  %173 = vmatpush.msra.mxu0 %v153_v25  ;;  %v145_v41 = vld [vmem:[#allocation8 + $0x50] sm:$0xff]  ;;  %v148_v42 = vld [vmem:[#allocation8 + $0x68] sm:$0xff]  ;;  %v110_v43 = vld [vmem:[#allocation7 + $0x40] sm:$0xff] }
  0x25   :  { %192 = vmatpush.msra.mxu1 %v156_v26  ;;  %214 = vmatpush.msra.mxu2 %v118_v27  ;;  %v111_v44 = vld [vmem:[#allocation7 + $0x48] sm:$0xff]  ;;  %v143_v45 = vld [vmem:[#allocation8 + $0x40] sm:$0xff]  ;;  %v146_v46 = vld [vmem:[#allocation8 + $0x58] sm:$0xff] }
  0x26   :  { %234 = vmatpush.msra.mxu3 %v119_v28  ;;  %174 = vmatpush.msra.mxu0 %v151_v29  ;;  %v108_v47 = vld [vmem:[#allocation7 + $0x30] sm:$0xff]  ;;  %v109_v48 = vld [vmem:[#allocation7 + $0x38] sm:$0xff]  ;;  %v144_v50 = vld [vmem:[#allocation8 + $0x48] sm:$0xff] }
  0x27   :  { %193 = vmatpush.msra.mxu1 %v154_v30  ;;  %215 = vmatpush.msra.mxu2 %v116_v31  ;;  %v141_v49 = vld [vmem:[#allocation8 + $0x30] sm:$0xff]  ;;  %v106_v51 = vld [vmem:[#allocation7 + $0x20] sm:$0xff]  ;;  %v107_v52 = vld [vmem:[#allocation7 + $0x28] sm:$0xff] }
  0x28   :  { %235 = vmatpush.msra.mxu3 %v117_v32  ;;  %175 = vmatpush.msra.mxu0 %v149_v33  ;;  %v139_v53 = vld [vmem:[#allocation8 + $0x20] sm:$0xff]  ;;  %v142_v54 = vld [vmem:[#allocation8 + $0x38] sm:$0xff]  ;;  %v104_v55 = vld [vmem:[#allocation7 + $0x10] sm:$0xff] }
  0x29   :  { %194 = vmatpush.msra.mxu1 %v152_v34  ;;  %216 = vmatpush.msra.mxu2 %v114_v35  ;;  %v105_v56 = vld [vmem:[#allocation7 + $0x18] sm:$0xff]  ;;  %v137_v57 = vld [vmem:[#allocation8 + $0x10] sm:$0xff]  ;;  %v140_v58 = vld [vmem:[#allocation8 + $0x28] sm:$0xff] }
  0x2a   :  { %236 = vmatpush.msra.mxu3 %v115_v36  ;;  %176 = vmatpush.msra.mxu0 %v147_v37  ;;  %v102_v59 = vld [vmem:[#allocation7] sm:$0xff]  ;;  %v103_v60 = vld [vmem:[#allocation7 + $0x8] sm:$0xff]  ;;  %v101_v61 = vld [vmem:[#allocation2] sm:$0xff] }
  0x2b   :  { %195 = vmatpush.msra.mxu1 %v150_v38  ;;  %217 = vmatpush.msra.mxu2 %v112_v39  ;;  %v135_v62 = vld [vmem:[#allocation8] sm:$0xff]  ;;  %v138_v63 = vld [vmem:[#allocation8 + $0x18] sm:$0xff]  ;;  %v136_v2 = vld [vmem:[#allocation8 + $0x8] sm:$0xff] }
  0x2c   :  { %237 = vmatpush.msra.mxu3 %v113_v40  ;;  %177 = vmatpush.msra.mxu0 %v145_v41  ;;  %v134_v0 = vld [vmem:[#allocation5] sm:$0xff]  ;;  %v287_v3 = vld [vmem:[#allocation10 + $0xf0] sm:$0xff]  ;;  %v286_v4 = vld [vmem:[#allocation10 + $0xe8] sm:$0xff] }
  0x2d   :  { %196 = vmatpush.msra.mxu1 %v148_v42  ;;  %218 = vmatpush.msra.mxu2 %v110_v43  ;;  %v288_v1 = vld [vmem:[#allocation10 + $0xf8] sm:$0xff]  ;;  %v285_v5 = vld [vmem:[#allocation10 + $0xe0] sm:$0xff]  ;;  %v319_v6 = vld [vmem:[#allocation10 + $0x1f0] sm:$0xff] }
  0x2e   :  { %238 = vmatpush.msra.mxu3 %v111_v44  ;;  %178 = vmatpush.msra.mxu0 %v143_v45  ;;  %v320_v7 = vld [vmem:[#allocation10 + $0x1f8] sm:$0xff]  ;;  %v283_v9 = vld [vmem:[#allocation10 + $0xd0] sm:$0xff]  ;;  %v317_v10 = vld [vmem:[#allocation10 + $0x1e0] sm:$0xff] }
  0x2f   :  { %197 = vmatpush.msra.mxu1 %v146_v46  ;;  %219 = vmatpush.msra.mxu2 %v108_v47  ;;  %v284_v8 = vld [vmem:[#allocation10 + $0xd8] sm:$0xff]  ;;  %v318_v11 = vld [vmem:[#allocation10 + $0x1e8] sm:$0xff]  ;;  %v281_v13 = vld [vmem:[#allocation10 + $0xc0] sm:$0xff] }
  0x30   :  { %239 = vmatpush.msra.mxu3 %v109_v48  ;;  %179 = vmatpush.msra.mxu0 %v141_v49  ;;  %v282_v12 = vld [vmem:[#allocation10 + $0xc8] sm:$0xff]  ;;  %v315_v14 = vld [vmem:[#allocation10 + $0x1d0] sm:$0xff]  ;;  %v316_v15 = vld [vmem:[#allocation10 + $0x1d8] sm:$0xff] }
  0x31   :  { %198 = vmatpush.msra.mxu1 %v144_v50  ;;  %220 = vmatpush.msra.mxu2 %v106_v51  ;;  %v280_v16 = vld [vmem:[#allocation10 + $0xb8] sm:$0xff]  ;;  %v279_v17 = vld [vmem:[#allocation10 + $0xb0] sm:$0xff]  ;;  %v313_v18 = vld [vmem:[#allocation10 + $0x1c0] sm:$0xff] }
  0x32   :  { %240 = vmatpush.msra.mxu3 %v107_v52  ;;  %180 = vmatpush.msra.mxu0 %v139_v53  ;;  %v314_v19 = vld [vmem:[#allocation10 + $0x1c8] sm:$0xff]  ;;  %v277_v21 = vld [vmem:[#allocation10 + $0xa0] sm:$0xff]  ;;  %v311_v22 = vld [vmem:[#allocation10 + $0x1b0] sm:$0xff] }
  0x33   :  { %199 = vmatpush.msra.mxu1 %v142_v54  ;;  %221 = vmatpush.msra.mxu2 %v104_v55  ;;  %v278_v20 = vld [vmem:[#allocation10 + $0xa8] sm:$0xff]  ;;  %v312_v23 = vld [vmem:[#allocation10 + $0x1b8] sm:$0xff]  ;;  %v275_v25 = vld [vmem:[#allocation10 + $0x90] sm:$0xff] }
  0x34   :  { %241 = vmatpush.msra.mxu3 %v105_v56  ;;  %181 = vmatpush.msra.mxu0 %v137_v57  ;;  %v276_v24 = vld [vmem:[#allocation10 + $0x98] sm:$0xff]  ;;  %v309_v26 = vld [vmem:[#allocation10 + $0x1a0] sm:$0xff]  ;;  %v310_v27 = vld [vmem:[#allocation10 + $0x1a8] sm:$0xff] }
  0x35   :  { %200 = vmatpush.msra.mxu1 %v140_v58  ;;  %222 = vmatpush.msra.mxu2 %v102_v59  ;;  %v274_v28 = vld [vmem:[#allocation10 + $0x88] sm:$0xff]  ;;  %v273_v29 = vld [vmem:[#allocation10 + $0x80] sm:$0xff]  ;;  %v307_v30 = vld [vmem:[#allocation10 + $0x190] sm:$0xff] }
  0x36   :  { %242 = vmatpush.msra.mxu3 %v103_v60  ;;  %223 = vmatmul.f32.vlgmr.msra.gmra.mxu2 %v101_v61  ;;  %v308_v31 = vld [vmem:[#allocation10 + $0x198] sm:$0xff]  ;;  %v271_v33 = vld [vmem:[#allocation10 + $0x70] sm:$0xff]  ;;  %v305_v34 = vld [vmem:[#allocation10 + $0x180] sm:$0xff] }
  0x37   :  { %243 = vmatmul.f32.vlgmr.msra.gmra.mxu3 %v101_v61  ;;  %182 = vmatpush.msra.mxu0 %v135_v62  ;;  %v272_v32 = vld [vmem:[#allocation10 + $0x78] sm:$0xff]  ;;  %v306_v35 = vld [vmem:[#allocation10 + $0x188] sm:$0xff]  ;;  %v269_v37 = vld [vmem:[#allocation10 + $0x60] sm:$0xff] }
  0x38   :  { %201 = vmatpush.msra.mxu1 %v138_v63  ;;  %183 = vmatmul.f32.vlgmr.msra.gmra.mxu0 %v134_v0  ;;  %v270_v36 = vld [vmem:[#allocation10 + $0x68] sm:$0xff]  ;;  %v303_v38 = vld [vmem:[#allocation10 + $0x170] sm:$0xff]  ;;  %v304_v39 = vld [vmem:[#allocation10 + $0x178] sm:$0xff] }
  0x39   :  { %367 = vmatpush.msrb.mxu2 %v288_v1  ;;  %327 = vmatpush.msrb.mxu0 %v287_v3  ;;  %v268_v40 = vld [vmem:[#allocation10 + $0x58] sm:$0xff]  ;;  %v267_v41 = vld [vmem:[#allocation10 + $0x50] sm:$0xff]  ;;  %v301_v42 = vld [vmem:[#allocation10 + $0x160] sm:$0xff] }
  0x3a   :  { %202 = vmatpush.msra.mxu1 %v136_v2  ;;  %387 = vmatpush.msrb.mxu3 %v320_v7  ;;  %v302_v43 = vld [vmem:[#allocation10 + $0x168] sm:$0xff]  ;;  %v265_v45 = vld [vmem:[#allocation10 + $0x40] sm:$0xff]  ;;  %v299_v46 = vld [vmem:[#allocation10 + $0x150] sm:$0xff] }
  0x3b   :  { %203 = vmatmul.f32.vlgmr.msra.gmra.mxu1 %v134_v0  ;;  %368 = vmatpush.msrb.mxu2 %v286_v4  ;;  %v266_v44 = vld [vmem:[#allocation10 + $0x48] sm:$0xff]  ;;  %v300_v47 = vld [vmem:[#allocation10 + $0x158] sm:$0xff]  ;;  %v263_v48 = vld [vmem:[#allocation10 + $0x30] sm:$0xff] }
  0x3c   :  { %328 = vmatpush.msrb.mxu0 %v285_v5  ;;  %347 = vmatpush.msrb.mxu1 %v319_v6  ;;  %v297_v49 = vld [vmem:[#allocation10 + $0x140] sm:$0xff]  ;;  %v264_v50 = vld [vmem:[#allocation10 + $0x38] sm:$0xff]  ;;  %v298_v51 = vld [vmem:[#allocation10 + $0x148] sm:$0xff] }
  0x3d   :  { %369 = vmatpush.msrb.mxu2 %v284_v8  ;;  %388 = vmatpush.msrb.mxu3 %v318_v11  ;;  %v261_v52 = vld [vmem:[#allocation10 + $0x20] sm:$0xff]  ;;  %v295_v53 = vld [vmem:[#allocation10 + $0x130] sm:$0xff]  ;;  %v262_v54 = vld [vmem:[#allocation10 + $0x28] sm:$0xff] }
  0x3e   :  { %329 = vmatpush.msrb.mxu0 %v283_v9  ;;  %348 = vmatpush.msrb.mxu1 %v317_v10  ;;  %v296_v55 = vld [vmem:[#allocation10 + $0x138] sm:$0xff]  ;;  %v259_v56 = vld [vmem:[#allocation10 + $0x10] sm:$0xff]  ;;  %v293_v57 = vld [vmem:[#allocation10 + $0x120] sm:$0xff] }
  0x3f   :  { %370 = vmatpush.msrb.mxu2 %v282_v12  ;;  %389 = vmatpush.msrb.mxu3 %v316_v15  ;;  %v260_v58 = vld [vmem:[#allocation10 + $0x18] sm:$0xff]  ;;  %v294_v59 = vld [vmem:[#allocation10 + $0x128] sm:$0xff]  ;;  %v257_v60 = vld [vmem:[#allocation10] sm:$0xff] }
  0x40   :  { %330 = vmatpush.msrb.mxu0 %v281_v13  ;;  %349 = vmatpush.msrb.mxu1 %v315_v14  ;;  %v291_v61 = vld [vmem:[#allocation10 + $0x110] sm:$0xff]  ;;  %v258_v62 = vld [vmem:[#allocation10 + $0x8] sm:$0xff]  ;;  %v292_v63 = vld [vmem:[#allocation10 + $0x118] sm:$0xff] }
  0x41   :  { %371 = vmatpush.msrb.mxu2 %v280_v16  ;;  %390 = vmatpush.msrb.mxu3 %v314_v19  ;;  %v289_v0 = vld [vmem:[#allocation10 + $0x100] sm:$0xff]  ;;  %v290_v1 = vld [vmem:[#allocation10 + $0x108] sm:$0xff]  ;;  %v247_v2 = vld [vmem:[%s664_s4] sm:$0x3]  ;;  %s595_s4 = smov [#allocation11]  }
  0x42   :  { %331 = vmatpush.msrb.mxu0 %v279_v17  ;;  %350 = vmatpush.msrb.mxu1 %v313_v18  ;;  %v249_v5 = vperm.slane %v247_v2, 0  ;;  %v250_v6 = vperm.slane %v247_v2, 1  ;;  %v321_v15 = vld [vmem:[%s666_s6] sm:$0x3]  ;;  %s414_s27 = sshll.u32 %s595_s4, 4  ;;  %s415_s27 = int_to_ptr.vmem [resolvable:$true] %s414_s27 }
  0x43   :  { %372 = vmatpush.msrb.mxu2 %v278_v20  ;;  %391 = vmatpush.msrb.mxu3 %v312_v23  ;;  %v323_v16 = vperm.slane %v321_v15, 0 }
  0x44   :  { %332 = vmatpush.msrb.mxu0 %v277_v21  ;;  %351 = vmatpush.msrb.mxu1 %v311_v22  ;;  %v324_v21 = vperm.slane %v321_v15, 1 }
  0x45   :  { %373 = vmatpush.msrb.mxu2 %v276_v24  ;;  %392 = vmatpush.msrb.mxu3 %v310_v27 }
  0x46   :  { %333 = vmatpush.msrb.mxu0 %v275_v25  ;;  %352 = vmatpush.msrb.mxu1 %v309_v26 }
  0x47   :  { %374 = vmatpush.msrb.mxu2 %v274_v28  ;;  %393 = vmatpush.msrb.mxu3 %v308_v31 }
  0x48   :  { %334 = vmatpush.msrb.mxu0 %v273_v29  ;;  %353 = vmatpush.msrb.mxu1 %v307_v30 }
  0x49   :  { %375 = vmatpush.msrb.mxu2 %v272_v32  ;;  %394 = vmatpush.msrb.mxu3 %v306_v35 }
  0x4a   :  { %335 = vmatpush.msrb.mxu0 %v271_v33  ;;  %354 = vmatpush.msrb.mxu1 %v305_v34 }
  0x4b   :  { %376 = vmatpush.msrb.mxu2 %v270_v36  ;;  %395 = vmatpush.msrb.mxu3 %v304_v39 }
  0x4c   :  { %336 = vmatpush.msrb.mxu0 %v269_v37  ;;  %355 = vmatpush.msrb.mxu1 %v303_v38 }
  0x4d   :  { %377 = vmatpush.msrb.mxu2 %v268_v40  ;;  %396 = vmatpush.msrb.mxu3 %v302_v43 }
  0x4e   :  { %337 = vmatpush.msrb.mxu0 %v267_v41  ;;  %356 = vmatpush.msrb.mxu1 %v301_v42 }
  0x4f   :  { %378 = vmatpush.msrb.mxu2 %v266_v44  ;;  %397 = vmatpush.msrb.mxu3 %v300_v47 }
  0x50   :  { %338 = vmatpush.msrb.mxu0 %v265_v45  ;;  %357 = vmatpush.msrb.mxu1 %v299_v46 }
  0x51   :  { %379 = vmatpush.msrb.mxu2 %v264_v50  ;;  %398 = vmatpush.msrb.mxu3 %v298_v51 }
  0x52   :  { %339 = vmatpush.msrb.mxu0 %v263_v48  ;;  %358 = vmatpush.msrb.mxu1 %v297_v49 }
  0x53   :  { %380 = vmatpush.msrb.mxu2 %v262_v54  ;;  %399 = vmatpush.msrb.mxu3 %v296_v55 }
  0x54   :  { %340 = vmatpush.msrb.mxu0 %v261_v52  ;;  %359 = vmatpush.msrb.mxu1 %v295_v53 }
  0x55   :  { %381 = vmatpush.msrb.mxu2 %v260_v58  ;;  %400 = vmatpush.msrb.mxu3 %v294_v59 }
  0x56   :  { %341 = vmatpush.msrb.mxu0 %v259_v56  ;;  %360 = vmatpush.msrb.mxu1 %v293_v57 }
  0x57   :  { %382 = vmatpush.msrb.mxu2 %v258_v62  ;;  %401 = vmatpush.msrb.mxu3 %v292_v63 }
  0x58   :  { %342 = vmatpush.msrb.mxu0 %v257_v60  ;;  %361 = vmatpush.msrb.mxu1 %v291_v61 }
  0x59   :  { %402 = vmatpush.msrb.mxu3 %v290_v1 }
  0x5a   :  { %362 = vmatpush.msrb.mxu1 %v289_v0 }
  0xb5   :  { %v184_v3 = vpop.f32.mrf.mxu0 }
  0xb8   :  { %v204_v4 = vpop.f32.mrf.mxu1 }
  0xb9   :  { %v224_v7 = vpop.f32.mrf.mxu2 }
  0xba   :  { %v244_v8 = vpop.f32.mrf.mxu3  ;;  %v225_v9 = vadd.f32 %v224_v7, %v184_v3 }
  0xbb   :  { %v245_v10 = vadd.f32 %v244_v8, %v204_v4 }
  0xbc   :  { %v253_v11 = vadd.f32 %v249_v5, %v225_v9 }
  0xbd   :  { %v254_v12 = vadd.f32 %v250_v6, %v245_v10 }
  0xbe   :  { %v255_v13 = vmax.f32 %v253_v11, 0.0 }
  0xbf   :  { %v256_v14 = vmax.f32 %v254_v12, 0.0 }
  0xc0   :  { %343 = vmatmul.f32.vlgmr.msrb.gmra.mxu0 %v255_v13  ;;  %383 = vmatmul.f32.vlgmr.msrb.gmra.mxu2 %v255_v13 }
  0xc1   :  { %363 = vmatmul.f32.vlgmr.msrb.gmra.mxu1 %v256_v14  ;;  %403 = vmatmul.f32.vlgmr.msrb.gmra.mxu3 %v256_v14 }
 0x13d   :  { %v344_v17 = vpop.f32.mrf.mxu0 }
 0x13e   :  { %v345_v18 = vadd.f32 %v344_v17, %v323_v16  ;;  %v364_v19 = vpop.f32.mrf.mxu1 }
 0x140   :  { %v365_v20 = vadd.f32 %v364_v19, %v345_v18 }
 0x142   :  { %407 = vst [vmem:[#allocation11] sm:$0xff] %v365_v20 }
 0x143   :  { %v384_v22 = vpop.f32.mrf.mxu2 }
 0x144   :  { %v385_v23 = vadd.f32 %v384_v22, %v324_v21  ;;  %v404_v24 = vpop.f32.mrf.mxu3 }
 0x146   :  { %v405_v25 = vadd.f32 %v404_v24, %v385_v23 }
 0x148   :  { %408 = vst [vmem:[#allocation11 + $0x8] sm:$0xff] %v405_v25 }
 0x149   :  { %419 = dma.vmem_to_hbm [thread:$0]  %s415_s27, 256, %s417_s30, [#allocation4]  }
 0x14a   :  { %586 = dma.done.wait [#allocation4], 256  }
 0x14b   :  { %587 = vsyncadd [#allocation4], 4294967040 }
 0x14c   :  { %424 = vsyncpa [#allocation3], 1 }
 0x14d   :  { %425 = vsyncpa [#allocation6], 1 }
 0x14e   :  { %426 = vsyncpa [#allocation9], 1 }
 0x14f   :  { %427 = vsyncpa [#allocation4], 1 }

</bundles_post_ra>
